<compile_context>
chip_gen: v7x
topology: tpu7x:2x2x1
jax: 0.10.0
libtpu: 0.0.40
codegen_flags: <defaults>
</compile_context>

<pallas_src>
import math
import jax
import jax.numpy as jnp
from jax import lax
from jax.experimental import pallas as pl
from jax.experimental.pallas import tpu as pltpu

_PAD_BIAS = float(jnp.finfo(jnp.float32).min)   # padded vocab lanes can never win argmax


# ---------------------------------------------------------------------------
# Fused kernel
# ---------------------------------------------------------------------------
def _lg_classifier_kernel(frag_ref, prod_ref, base_emb_ref, cmol_ref, wp_ref, bp_ref,
                          w1_prev_ref, w1_prod_ref, w1_frag_ref, b1_ref,
                          w2_ref, b2_ref, out_ref):
    bb = prod_ref.shape[0]                  # batch rows handled by this program
    T = frag_ref.shape[1]                   # decoding steps (static, small)
    mlp = w1_prev_ref.shape[1]
    v_real = base_emb_ref.shape[0] + cmol_ref.shape[0]   # true vocab size
    v_pad = w2_ref.shape[1]                 # lane-padded vocab (multiple of 128)

    # --- lg_embedding = cat([base_embeddings, W_proj(cmol)], dim=0)  (fused W_proj)
    proj = jnp.dot(cmol_ref[...], wp_ref[...],
                   preferred_element_type=jnp.float32) + bp_ref[...]
    lg_emb = jnp.concatenate([base_emb_ref[...], proj], axis=0)          # (v_real, E)

    # --- fold the argmax-gather with W1_prev:
    #     (one_hot @ lg_emb) @ W1_prev == one_hot @ (lg_emb @ W1_prev)
    # precompute the (Vpad, mlp) table once; padded rows are zero so a (bb, Vpad)
    # one-hot with lane-dense K can be used directly.
    emb_w1 = jnp.dot(lg_emb, w1_prev_ref[...],
                     preferred_element_type=jnp.float32)                 # (v_real, mlp)
    emb_w1_pad = jnp.concatenate(
        [emb_w1, jnp.zeros((v_pad - v_real, mlp), jnp.float32)], axis=0)  # (v_pad, mlp)

    # --- step-invariant pieces, hoisted out of the recurrence
    prod_part = jnp.dot(prod_ref[...], w1_prod_ref[...],
                        preferred_element_type=jnp.float32) + b1_ref[...]  # (bb, mlp)
    frag = frag_ref[...]                                                  # (bb, T, H)
    # frag matmuls are independent of the recurrence -> issue all of them up front,
    # off the serial dependence chain (and the frag[:, t, :] slice leaves the hot loop).
    frag_parts = [
        jnp.dot(frag[:, t, :], w1_frag_ref[...], preferred_element_type=jnp.float32)
        for t in range(T)
    ]
    w2 = w2_ref[...]
    b2b = jnp.broadcast_to(b2_ref[...], (bb, v_pad))     # hoisted: no per-step broadcast
    iota_pad = lax.broadcasted_iota(jnp.int32, (bb, v_pad), 1)

    # init_state argmax == 0  =>  prev = lg_embedding[0]  =>  prev @ W1_prev = emb_w1[0]
    prev_part = jnp.broadcast_to(emb_w1_pad[0:1, :], (bb, mlp))

    # T is tiny & static: fully unrolled; per step only two matmuls sit on the
    # serial critical path (h @ W2 and one_hot @ emb_w1) plus two XLU reductions.
    for t in range(T):
        h = jnp.maximum(prev_part + frag_parts[t] + prod_part, 0.0)       # (bb, mlp)
        s = jnp.dot(h, w2, preferred_element_type=jnp.float32) + b2b      # (bb, v_pad)
        out_ref[:, t, :] = s

        if t + 1 < T:   # last step's gather result is never used
            # first-max (torch/jnp argmax) semantics via exact tie-break.
            m = jnp.max(s, axis=-1, keepdims=True)
            idx = jnp.min(jnp.where(s == m, iota_pad, v_pad), axis=-1, keepdims=True)
            one_hot = (iota_pad == idx).astype(jnp.float32)               # (bb, v_pad)
            prev_part = jnp.dot(one_hot, emb_w1_pad,
                                preferred_element_type=jnp.float32)       # (bb, mlp)


# ---------------------------------------------------------------------------
# Generation-aware batch blocking
# ---------------------------------------------------------------------------
def _tensorcores_per_chip():
    """v5e / v6e expose 1 TensorCore per chip; v7x exposes 2 (grid 'parallel' axis
    shards across them). Anything unknown -> assume 1 (grid of 1 is always safe)."""
    try:
        kind = getattr(jax.devices()[0], "device_kind", "") or ""
    except Exception:
        return 1
    return 2 if "v7" in kind.lower() else 1


def _pick_batch_block(B, n_cores):
    """grid=(1,) on single-core parts (extra grid steps are pure serial overhead);
    on v7x exactly one block per TensorCore, rows 8-aligned, never more than 2 blocks.
    VMEM is never the constraint at these working-set sizes."""
    if n_cores <= 1:
        return B
    if B % (8 * n_cores) == 0:
        return B // n_cores
    return B   # can't split into 8-row-aligned equal blocks -> keep one program


# ---------------------------------------------------------------------------
# One-time parameter preparation (out of the per-call path)
# ---------------------------------------------------------------------------
def prepare_lg_params(base_embeddings, wp, bp, w1, b1, w2, b2):
    """Vocab lane-padding + W1 row split, done once at parameter-init time so the
    per-forward wrapper emits no extra XLA pad/slice ops."""
    n_base, E = base_embeddings.shape
    H = wp.shape[0]
    V = w2.shape[1]
    Vpad = 128 * pl.cdiv(V, 128)
    # padded W2 columns are exactly 0 and padded bias columns are float32 min, so the
    # in-kernel first-max argmax can never select a padded lane.
    w2p = jnp.pad(w2, ((0, 0), (0, Vpad - V)))
    b2p = jnp.pad(b2, ((0, 0), (0, Vpad - V)), constant_values=_PAD_BIAS)
    return {
        "base_embeddings": base_embeddings,
        "wp": wp, "bp": bp,
        "w1_prev": w1[:E],            # rows acting on prev_lg_emb
        "w1_prod": w1[E:E + H],       # rows acting on prod_vecs
        "w1_frag": w1[E + H:],        # rows acting on frag_vecs
        "b1": b1,
        "w2": w2p, "b2": b2p,
        "vocab_size": V,
    }


# ---------------------------------------------------------------------------
# Per-call wrapper: just the pallas_call (no per-call pads/slices/transposes)
# ---------------------------------------------------------------------------
def lg_logits_pallas(frag_vecs_pad, prod_vecs, cmol, params):
    """frag_vecs_pad: (B,T,H)  prod_vecs: (B,H)  cmol: (n_lg,H)
    Returns lane-padded logits (B, T, Vpad); padded lanes hold float32-min, so
    downstream argmax / CE consumers can use them directly, or slice [..., :V]
    once at the final consumer."""
    B, T, H = frag_vecs_pad.shape
    base = params["base_embeddings"]
    n_base, E = base.shape
    n_lg = cmol.shape[0]
    mlp = params["w1_prev"].shape[1]
    Vpad = params["w2"].shape[1]

    bb = _pick_batch_block(B, _tensorcores_per_chip())
    grid = (B // bb,)

    def rep2(i):          # replicated (grid-invariant) 2-D operand
        return (0, 0)

    in_specs = [
        pl.BlockSpec((bb, T, H), lambda i: (i, 0, 0)),   # frag_vecs_pad
        pl.BlockSpec((bb, H), lambda i: (i, 0)),         # prod_vecs
        pl.BlockSpec((n_base, E), rep2),                 # base_embeddings
        pl.BlockSpec((n_lg, H), rep2),                   # cmol
        pl.BlockSpec((H, E), rep2),                      # W_proj weight
        pl.BlockSpec((1, E), rep2),                      # W_proj bias
        pl.BlockSpec((E, mlp), rep2),                    # W1 (prev rows)
        pl.BlockSpec((H, mlp), rep2),                    # W1 (prod rows)
        pl.BlockSpec((H, mlp), rep2),                    # W1 (frag rows)
        pl.BlockSpec((1, mlp), rep2),                    # b1
        pl.BlockSpec((mlp, Vpad), rep2),                 # W2 (lane-padded)
        pl.BlockSpec((1, Vpad), rep2),                   # b2 (lane-padded)
    ]
    out_spec = pl.BlockSpec((bb, T, Vpad), lambda i: (i, 0, 0))

    return pl.pallas_call(
        _lg_classifier_kernel,
        out_shape=jax.ShapeDtypeStruct((B, T, Vpad), jnp.float32),
        grid_spec=pltpu.PrefetchScalarGridSpec(
            num_scalar_prefetch=0,
            grid=grid,
            in_specs=in_specs,
            out_specs=out_spec,
        ),
        compiler_params=pltpu.CompilerParams(
            dimension_semantics=("parallel",)   # batch blocks are independent
        ),
    )(frag_vecs_pad, prod_vecs, base, cmol, params["wp"], params["bp"],
      params["w1_prev"], params["w1_prod"], params["w1_frag"], params["b1"],
      params["w2"], params["b2"])


# ---------------------------------------------------------------------------
# Pure-JAX reference (matches the torch module's eval-mode semantics)
# ---------------------------------------------------------------------------
def lg_logits_ref(frag_vecs_pad, prod_vecs, base_embeddings, cmol,
                  wp, bp, w1, b1, w2, b2):
    B, T, H = frag_vecs_pad.shape
    lg_embedding = jnp.concatenate([base_embeddings, cmol @ wp + bp], axis=0)
    V, E = lg_embedding.shape
    prev = jnp.broadcast_to(lg_embedding[0:1], (B, E))
    scores = []
    for t in range(T):
        x = jnp.concatenate([prev, prod_vecs, frag_vecs_pad[:, t]], axis=-1)
        h = jnp.maximum(x @ w1 + b1, 0.0)
        s = h @ w2 + b2
        scores.append(s)
        prev = lg_embedding[jnp.argmax(s, axis=-1)]
    return jnp.stack(scores, axis=1)


# ---------------------------------------------------------------------------
# Deterministic parameter construction (shapes follow _build_layers)
# ---------------------------------------------------------------------------
def _kaiming_uniform(key, shape, fan_in):
    bound = math.sqrt(6.0 / ((1.0 + 5.0) * fan_in))  # a = sqrt(5)
    return jax.random.uniform(key, shape, jnp.float32, -bound, bound)


if __name__ == "__main__":
    # small config consistent with the module
    mpn_size = 32      # config['mpn_size']
    embed_size = 16    # config['embed_size']
    mlp_size = 32      # config['mlp_size']
    n_lg_mols = 4      # leaving-group molecules encoded by the shared encoder
    vocab = 4 + n_lg_mols        # 4 base embeddings + projected lg-mol embeddings
    B, T = 8, 4                  # batch, max fragments per example
    in_dim = embed_size + 2 * mpn_size   # use_prev_pred=True

    key = jax.random.PRNGKey(0)
    keys = jax.random.split(key, 10)

    # parameters (deterministic, synthetic)
    base_embeddings = _kaiming_uniform(keys[0], (4, embed_size), embed_size)
    wp = _kaiming_uniform(keys[1], (mpn_size, embed_size), mpn_size)     # W_proj (in,out)
    bp = _kaiming_uniform(keys[2], (1, embed_size), mpn_size)
    w1 = _kaiming_uniform(keys[3], (in_dim, mlp_size), in_dim)           # lg_score layer 1
    b1 = _kaiming_uniform(keys[4], (1, mlp_size), in_dim)
    w2 = _kaiming_uniform(keys[5], (mlp_size, vocab), mlp_size)          # lg_score layer 2
    b2 = _kaiming_uniform(keys[6], (1, vocab), mlp_size)

    # encoder outputs (stand-ins for GraphFeatEncoder results)
    prod_vecs = jax.random.normal(keys[7], (B, mpn_size), jnp.float32)
    frag_vecs_pad = jax.random.normal(keys[8], (B, T, mpn_size), jnp.float32)
    cmol = jax.random.normal(keys[9], (n_lg_mols, mpn_size), jnp.float32)

    # one-time weight preparation (out of the per-forward path)
    params = prepare_lg_params(base_embeddings, wp, bp, w1, b1, w2, b2)

    logits_pad = lg_logits_pallas(frag_vecs_pad, prod_vecs, cmol, params)
    logits_pad = jax.block_until_ready(logits_pad)
    logits = logits_pad[..., :vocab]     # slice once, at the final consumer

    ref = lg_logits_ref(frag_vecs_pad, prod_vecs, base_embeddings, cmol,
                        wp, bp, w1, b1, w2, b2)
    assert logits.shape == (B, T, vocab)
    assert jnp.allclose(logits, ref, atol=1e-4, rtol=1e-4), "mismatch vs JAX reference"

    print("KERNEL_OK")
</pallas_src>

<mosaic_0001>
module attributes {stable_mosaic.version = 11 : i64} {
  func.func @_lg_classifier_kernel(%arg0: i32, %arg1: memref<8x4x32xf32, #tpu.memory_space<vmem>>, %arg2: memref<8x32xf32, #tpu.memory_space<vmem>>, %arg3: memref<4x16xf32, #tpu.memory_space<vmem>>, %arg4: memref<4x32xf32, #tpu.memory_space<vmem>>, %arg5: memref<32x16xf32, #tpu.memory_space<vmem>>, %arg6: memref<1x16xf32, #tpu.memory_space<vmem>>, %arg7: memref<16x32xf32, #tpu.memory_space<vmem>>, %arg8: memref<32x32xf32, #tpu.memory_space<vmem>>, %arg9: memref<32x32xf32, #tpu.memory_space<vmem>>, %arg10: memref<1x32xf32, #tpu.memory_space<vmem>>, %arg11: memref<32x128xf32, #tpu.memory_space<vmem>>, %arg12: memref<1x128xf32, #tpu.memory_space<vmem>>, %arg13: memref<8x4x128xf32, #tpu.memory_space<vmem>>) attributes {dimension_semantics = [#tpu.dimension_semantics<parallel>], iteration_bounds = array<i64: 1>, scalar_prefetch = 0 : i64, scratch_operands = 0 : i64, tpu.core_type = #tpu.core_type<tc>, window_params = [{transform_indices = @transform_0, window_bounds = array<i64: 8, 4, 32>}, {transform_indices = @transform_1, window_bounds = array<i64: 8, 32>}, {pipeline_mode = #tpu.pipeline_mode<synchronous>, transform_indices = @transform_2, window_bounds = array<i64: 4, 16>}, {pipeline_mode = #tpu.pipeline_mode<synchronous>, transform_indices = @transform_3, window_bounds = array<i64: 4, 32>}, {pipeline_mode = #tpu.pipeline_mode<synchronous>, transform_indices = @transform_4, window_bounds = array<i64: 32, 16>}, {pipeline_mode = #tpu.pipeline_mode<synchronous>, transform_indices = @transform_5, window_bounds = array<i64: 1, 16>}, {pipeline_mode = #tpu.pipeline_mode<synchronous>, transform_indices = @transform_6, window_bounds = array<i64: 16, 32>}, {pipeline_mode = #tpu.pipeline_mode<synchronous>, transform_indices = @transform_7, window_bounds = array<i64: 32, 32>}, {pipeline_mode = #tpu.pipeline_mode<synchronous>, transform_indices = @transform_8, window_bounds = array<i64: 32, 32>}, {pipeline_mode = #tpu.pipeline_mode<synchronous>, transform_indices = @transform_9, window_bounds = array<i64: 1, 32>}, {pipeline_mode = #tpu.pipeline_mode<synchronous>, transform_indices = @transform_10, window_bounds = array<i64: 32, 128>}, {pipeline_mode = #tpu.pipeline_mode<synchronous>, transform_indices = @transform_11, window_bounds = array<i64: 1, 128>}, {transform_indices = @transform_12, window_bounds = array<i64: 8, 4, 128>}]} {
    %c0 = arith.constant 0 : index
    %c0_0 = arith.constant 0 : index
    %0 = vector.load %arg4[%c0, %c0_0] : memref<4x32xf32, #tpu.memory_space<vmem>>, vector<4x32xf32>
    %c0_1 = arith.constant 0 : index
    %c0_2 = arith.constant 0 : index
    %1 = vector.load %arg5[%c0_1, %c0_2] : memref<32x16xf32, #tpu.memory_space<vmem>>, vector<32x16xf32>
    %cst = arith.constant dense<0.000000e+00> : vector<4x16xf32>
    %2 = tpu.matmul %0, %1, %cst {dimension_numbers = #tpu.dot_dimension_numbers<[1], [0], [0], [1], [0, 0, 1, 1], [], []>} : vector<4x32xf32>, vector<32x16xf32>, vector<4x16xf32> -> vector<4x16xf32>
    %c0_3 = arith.constant 0 : index
    %c0_4 = arith.constant 0 : index
    %3 = vector.load %arg6[%c0_3, %c0_4] : memref<1x16xf32, #tpu.memory_space<vmem>>, vector<1x16xf32>
    %4 = vector.broadcast %3 : vector<1x16xf32> to vector<4x16xf32>
    %5 = arith.addf %2, %4 : vector<4x16xf32>
    %c0_5 = arith.constant 0 : index
    %c0_6 = arith.constant 0 : index
    %6 = vector.load %arg3[%c0_5, %c0_6] : memref<4x16xf32, #tpu.memory_space<vmem>>, vector<4x16xf32>
    %7 = tpu.concatenate %6, %5 in 0 : vector<4x16xf32>, vector<4x16xf32> -> vector<8x16xf32>
    %c0_7 = arith.constant 0 : index
    %c0_8 = arith.constant 0 : index
    %8 = vector.load %arg7[%c0_7, %c0_8] : memref<16x32xf32, #tpu.memory_space<vmem>>, vector<16x32xf32>
    %cst_9 = arith.constant dense<0.000000e+00> : vector<8x32xf32>
    %9 = tpu.matmul %7, %8, %cst_9 {dimension_numbers = #tpu.dot_dimension_numbers<[1], [0], [0], [1], [0, 0, 1, 1], [], []>} : vector<8x16xf32>, vector<16x32xf32>, vector<8x32xf32> -> vector<8x32xf32>
    %cst_10 = arith.constant 0.000000e+00 : f32
    %10 = vector.broadcast %cst_10 : f32 to vector<120x32xf32>
    %11 = tpu.concatenate %9, %10 in 0 : vector<8x32xf32>, vector<120x32xf32> -> vector<128x32xf32>
    %c0_11 = arith.constant 0 : index
    %c0_12 = arith.constant 0 : index
    %12 = vector.load %arg2[%c0_11, %c0_12] : memref<8x32xf32, #tpu.memory_space<vmem>>, vector<8x32xf32>
    %c0_13 = arith.constant 0 : index
    %c0_14 = arith.constant 0 : index
    %13 = vector.load %arg8[%c0_13, %c0_14] : memref<32x32xf32, #tpu.memory_space<vmem>>, vector<32x32xf32>
    %cst_15 = arith.constant dense<0.000000e+00> : vector<8x32xf32>
    %14 = tpu.matmul %12, %13, %cst_15 {dimension_numbers = #tpu.dot_dimension_numbers<[1], [0], [0], [1], [0, 0, 1, 1], [], []>} : vector<8x32xf32>, vector<32x32xf32>, vector<8x32xf32> -> vector<8x32xf32>
    %c0_16 = arith.constant 0 : index
    %c0_17 = arith.constant 0 : index
    %15 = vector.load %arg10[%c0_16, %c0_17] : memref<1x32xf32, #tpu.memory_space<vmem>>, vector<1x32xf32>
    %16 = vector.broadcast %15 : vector<1x32xf32> to vector<8x32xf32>
    %17 = arith.addf %14, %16 : vector<8x32xf32>
    %c0_18 = arith.constant 0 : index
    %c0_19 = arith.constant 0 : index
    %c0_20 = arith.constant 0 : index
    %18 = vector.load %arg1[%c0_18, %c0_19, %c0_20] : memref<8x4x32xf32, #tpu.memory_space<vmem>>, vector<8x4x32xf32>
    %19 = vector.extract_strided_slice %18 {offsets = [0, 0, 0], sizes = [8, 1, 32], strides = [1, 1, 1]} : vector<8x4x32xf32> to vector<8x1x32xf32>
    %20 = vector.shape_cast %19 : vector<8x1x32xf32> to vector<8x32xf32>
    %c0_21 = arith.constant 0 : index
    %c0_22 = arith.constant 0 : index
    %21 = vector.load %arg9[%c0_21, %c0_22] : memref<32x32xf32, #tpu.memory_space<vmem>>, vector<32x32xf32>
    %cst_23 = arith.constant dense<0.000000e+00> : vector<8x32xf32>
    %22 = tpu.matmul %20, %21, %cst_23 {dimension_numbers = #tpu.dot_dimension_numbers<[1], [0], [0], [1], [0, 0, 1, 1], [], []>} : vector<8x32xf32>, vector<32x32xf32>, vector<8x32xf32> -> vector<8x32xf32>
    %23 = vector.extract_strided_slice %18 {offsets = [0, 1, 0], sizes = [8, 1, 32], strides = [1, 1, 1]} : vector<8x4x32xf32> to vector<8x1x32xf32>
    %24 = vector.shape_cast %23 : vector<8x1x32xf32> to vector<8x32xf32>
    %c0_24 = arith.constant 0 : index
    %c0_25 = arith.constant 0 : index
    %25 = vector.load %arg9[%c0_24, %c0_25] : memref<32x32xf32, #tpu.memory_space<vmem>>, vector<32x32xf32>
    %cst_26 = arith.constant dense<0.000000e+00> : vector<8x32xf32>
    %26 = tpu.matmul %24, %25, %cst_26 {dimension_numbers = #tpu.dot_dimension_numbers<[1], [0], [0], [1], [0, 0, 1, 1], [], []>} : vector<8x32xf32>, vector<32x32xf32>, vector<8x32xf32> -> vector<8x32xf32>
    %27 = vector.extract_strided_slice %18 {offsets = [0, 2, 0], sizes = [8, 1, 32], strides = [1, 1, 1]} : vector<8x4x32xf32> to vector<8x1x32xf32>
    %28 = vector.shape_cast %27 : vector<8x1x32xf32> to vector<8x32xf32>
    %c0_27 = arith.constant 0 : index
    %c0_28 = arith.constant 0 : index
    %29 = vector.load %arg9[%c0_27, %c0_28] : memref<32x32xf32, #tpu.memory_space<vmem>>, vector<32x32xf32>
    %cst_29 = arith.constant dense<0.000000e+00> : vector<8x32xf32>
    %30 = tpu.matmul %28, %29, %cst_29 {dimension_numbers = #tpu.dot_dimension_numbers<[1], [0], [0], [1], [0, 0, 1, 1], [], []>} : vector<8x32xf32>, vector<32x32xf32>, vector<8x32xf32> -> vector<8x32xf32>
    %31 = vector.extract_strided_slice %18 {offsets = [0, 3, 0], sizes = [8, 1, 32], strides = [1, 1, 1]} : vector<8x4x32xf32> to vector<8x1x32xf32>
    %32 = vector.shape_cast %31 : vector<8x1x32xf32> to vector<8x32xf32>
    %c0_30 = arith.constant 0 : index
    %c0_31 = arith.constant 0 : index
    %33 = vector.load %arg9[%c0_30, %c0_31] : memref<32x32xf32, #tpu.memory_space<vmem>>, vector<32x32xf32>
    %cst_32 = arith.constant dense<0.000000e+00> : vector<8x32xf32>
    %34 = tpu.matmul %32, %33, %cst_32 {dimension_numbers = #tpu.dot_dimension_numbers<[1], [0], [0], [1], [0, 0, 1, 1], [], []>} : vector<8x32xf32>, vector<32x32xf32>, vector<8x32xf32> -> vector<8x32xf32>
    %c0_33 = arith.constant 0 : index
    %c0_34 = arith.constant 0 : index
    %35 = vector.load %arg11[%c0_33, %c0_34] : memref<32x128xf32, #tpu.memory_space<vmem>>, vector<32x128xf32>
    %c0_35 = arith.constant 0 : index
    %c0_36 = arith.constant 0 : index
    %36 = vector.load %arg12[%c0_35, %c0_36] : memref<1x128xf32, #tpu.memory_space<vmem>>, vector<1x128xf32>
    %37 = vector.shape_cast %36 : vector<1x128xf32> to vector<1x128xf32>
    %38 = vector.broadcast %37 : vector<1x128xf32> to vector<8x128xf32>
    %39 = tpu.iota {dimensions = array<i32: 1>} : vector<8x128xi32>
    %40 = vector.extract_strided_slice %11 {offsets = [0, 0], sizes = [1, 32], strides = [1, 1]} : vector<128x32xf32> to vector<1x32xf32>
    %41 = vector.shape_cast %40 : vector<1x32xf32> to vector<1x32xf32>
    %42 = vector.broadcast %41 : vector<1x32xf32> to vector<8x32xf32>
    %43 = arith.addf %42, %22 : vector<8x32xf32>
    %44 = arith.addf %43, %17 : vector<8x32xf32>
    %cst_37 = arith.constant 0.000000e+00 : f32
    %45 = vector.broadcast %cst_37 : f32 to vector<8x32xf32>
    %46 = arith.maximumf %44, %45 : vector<8x32xf32>
    %cst_38 = arith.constant dense<0.000000e+00> : vector<8x128xf32>
    %47 = tpu.matmul %46, %35, %cst_38 {dimension_numbers = #tpu.dot_dimension_numbers<[1], [0], [0], [1], [0, 0, 1, 1], [], []>} : vector<8x32xf32>, vector<32x128xf32>, vector<8x128xf32> -> vector<8x128xf32>
    %48 = arith.addf %47, %38 : vector<8x128xf32>
    %c0_39 = arith.constant 0 : index
    %c0_40 = arith.constant 0 : index
    %c0_41 = arith.constant 0 : index
    %49 = vector.load %arg13[%c0_39, %c0_40, %c0_41] : memref<8x4x128xf32, #tpu.memory_space<vmem>>, vector<8x1x128xf32>
    %50 = vector.shape_cast %49 : vector<8x1x128xf32> to vector<8x128xf32>
    %51 = vector.shape_cast %48 : vector<8x128xf32> to vector<8x1x128xf32>
    tpu.vector_store %arg13[%c0_39, %c0_40, %c0_41], %51 {strides = array<i32>} : memref<8x4x128xf32, #tpu.memory_space<vmem>>, vector<8x1x128xf32>,
    %cst_42 = arith.constant dense<0xFF800000> : vector<8xf32>
    %52 = vector.multi_reduction <maximumf>, %48, %cst_42 [1] : vector<8x128xf32> to vector<8xf32>
    %53 = vector.shape_cast %52 : vector<8xf32> to vector<8x1xf32>
    %54 = vector.broadcast %53 : vector<8x1xf32> to vector<8x128xf32>
    %55 = arith.cmpf oeq, %48, %54 : vector<8x128xf32>
    %c128_i32 = arith.constant 128 : i32
    %56 = vector.broadcast %c128_i32 : i32 to vector<8x128xi32>
    %57 = arith.select %55, %39, %56 : vector<8x128xi1>, vector<8x128xi32>
    %cst_43 = arith.constant dense<2147483647> : vector<8xi32>
    %58 = vector.multi_reduction <minsi>, %57, %cst_43 [1] : vector<8x128xi32> to vector<8xi32>
    %59 = vector.shape_cast %58 : vector<8xi32> to vector<8x1xi32>
    %60 = vector.broadcast %59 : vector<8x1xi32> to vector<8x128xi32>
    %61 = arith.cmpi eq, %39, %60 : vector<8x128xi32>
    %62 = arith.extui %61 : vector<8x128xi1> to vector<8x128xi32>
    %63 = arith.sitofp %62 : vector<8x128xi32> to vector<8x128xf32>
    %cst_44 = arith.constant dense<0.000000e+00> : vector<8x32xf32>
    %64 = tpu.matmul %63, %11, %cst_44 {dimension_numbers = #tpu.dot_dimension_numbers<[1], [0], [0], [1], [0, 0, 1, 1], [], []>} : vector<8x128xf32>, vector<128x32xf32>, vector<8x32xf32> -> vector<8x32xf32>
    %65 = arith.addf %64, %26 : vector<8x32xf32>
    %66 = arith.addf %65, %17 : vector<8x32xf32>
    %cst_45 = arith.constant 0.000000e+00 : f32
    %67 = vector.broadcast %cst_45 : f32 to vector<8x32xf32>
    %68 = arith.maximumf %66, %67 : vector<8x32xf32>
    %cst_46 = arith.constant dense<0.000000e+00> : vector<8x128xf32>
    %69 = tpu.matmul %68, %35, %cst_46 {dimension_numbers = #tpu.dot_dimension_numbers<[1], [0], [0], [1], [0, 0, 1, 1], [], []>} : vector<8x32xf32>, vector<32x128xf32>, vector<8x128xf32> -> vector<8x128xf32>
    %70 = arith.addf %69, %38 : vector<8x128xf32>
    %c0_47 = arith.constant 0 : index
    %c1 = arith.constant 1 : index
    %c0_48 = arith.constant 0 : index
    %71 = vector.load %arg13[%c0_47, %c1, %c0_48] : memref<8x4x128xf32, #tpu.memory_space<vmem>>, vector<8x1x128xf32>
    %72 = vector.shape_cast %71 : vector<8x1x128xf32> to vector<8x128xf32>
    %73 = vector.shape_cast %70 : vector<8x128xf32> to vector<8x1x128xf32>
    tpu.vector_store %arg13[%c0_47, %c1, %c0_48], %73 {strides = array<i32>} : memref<8x4x128xf32, #tpu.memory_space<vmem>>, vector<8x1x128xf32>,
    %cst_49 = arith.constant dense<0xFF800000> : vector<8xf32>
    %74 = vector.multi_reduction <maximumf>, %70, %cst_49 [1] : vector<8x128xf32> to vector<8xf32>
    %75 = vector.shape_cast %74 : vector<8xf32> to vector<8x1xf32>
    %76 = vector.broadcast %75 : vector<8x1xf32> to vector<8x128xf32>
    %77 = arith.cmpf oeq, %70, %76 : vector<8x128xf32>
    %c128_i32_50 = arith.constant 128 : i32
    %78 = vector.broadcast %c128_i32_50 : i32 to vector<8x128xi32>
    %79 = arith.select %77, %39, %78 : vector<8x128xi1>, vector<8x128xi32>
    %cst_51 = arith.constant dense<2147483647> : vector<8xi32>
    %80 = vector.multi_reduction <minsi>, %79, %cst_51 [1] : vector<8x128xi32> to vector<8xi32>
    %81 = vector.shape_cast %80 : vector<8xi32> to vector<8x1xi32>
    %82 = vector.broadcast %81 : vector<8x1xi32> to vector<8x128xi32>
    %83 = arith.cmpi eq, %39, %82 : vector<8x128xi32>
    %84 = arith.extui %83 : vector<8x128xi1> to vector<8x128xi32>
    %85 = arith.sitofp %84 : vector<8x128xi32> to vector<8x128xf32>
    %cst_52 = arith.constant dense<0.000000e+00> : vector<8x32xf32>
    %86 = tpu.matmul %85, %11, %cst_52 {dimension_numbers = #tpu.dot_dimension_numbers<[1], [0], [0], [1], [0, 0, 1, 1], [], []>} : vector<8x128xf32>, vector<128x32xf32>, vector<8x32xf32> -> vector<8x32xf32>
    %87 = arith.addf %86, %30 : vector<8x32xf32>
    %88 = arith.addf %87, %17 : vector<8x32xf32>
    %cst_53 = arith.constant 0.000000e+00 : f32
    %89 = vector.broadcast %cst_53 : f32 to vector<8x32xf32>
    %90 = arith.maximumf %88, %89 : vector<8x32xf32>
    %cst_54 = arith.constant dense<0.000000e+00> : vector<8x128xf32>
    %91 = tpu.matmul %90, %35, %cst_54 {dimension_numbers = #tpu.dot_dimension_numbers<[1], [0], [0], [1], [0, 0, 1, 1], [], []>} : vector<8x32xf32>, vector<32x128xf32>, vector<8x128xf32> -> vector<8x128xf32>
    %92 = arith.addf %91, %38 : vector<8x128xf32>
    %c0_55 = arith.constant 0 : index
    %c2 = arith.constant 2 : index
    %c0_56 = arith.constant 0 : index
    %93 = vector.load %arg13[%c0_55, %c2, %c0_56] : memref<8x4x128xf32, #tpu.memory_space<vmem>>, vector<8x1x128xf32>
    %94 = vector.shape_cast %93 : vector<8x1x128xf32> to vector<8x128xf32>
    %95 = vector.shape_cast %92 : vector<8x128xf32> to vector<8x1x128xf32>
    tpu.vector_store %arg13[%c0_55, %c2, %c0_56], %95 {strides = array<i32>} : memref<8x4x128xf32, #tpu.memory_space<vmem>>, vector<8x1x128xf32>,
    %cst_57 = arith.constant dense<0xFF800000> : vector<8xf32>
    %96 = vector.multi_reduction <maximumf>, %92, %cst_57 [1] : vector<8x128xf32> to vector<8xf32>
    %97 = vector.shape_cast %96 : vector<8xf32> to vector<8x1xf32>
    %98 = vector.broadcast %97 : vector<8x1xf32> to vector<8x128xf32>
    %99 = arith.cmpf oeq, %92, %98 : vector<8x128xf32>
    %c128_i32_58 = arith.constant 128 : i32
    %100 = vector.broadcast %c128_i32_58 : i32 to vector<8x128xi32>
    %101 = arith.select %99, %39, %100 : vector<8x128xi1>, vector<8x128xi32>
    %cst_59 = arith.constant dense<2147483647> : vector<8xi32>
    %102 = vector.multi_reduction <minsi>, %101, %cst_59 [1] : vector<8x128xi32> to vector<8xi32>
    %103 = vector.shape_cast %102 : vector<8xi32> to vector<8x1xi32>
    %104 = vector.broadcast %103 : vector<8x1xi32> to vector<8x128xi32>
    %105 = arith.cmpi eq, %39, %104 : vector<8x128xi32>
    %106 = arith.extui %105 : vector<8x128xi1> to vector<8x128xi32>
    %107 = arith.sitofp %106 : vector<8x128xi32> to vector<8x128xf32>
    %cst_60 = arith.constant dense<0.000000e+00> : vector<8x32xf32>
    %108 = tpu.matmul %107, %11, %cst_60 {dimension_numbers = #tpu.dot_dimension_numbers<[1], [0], [0], [1], [0, 0, 1, 1], [], []>} : vector<8x128xf32>, vector<128x32xf32>, vector<8x32xf32> -> vector<8x32xf32>
    %109 = arith.addf %108, %34 : vector<8x32xf32>
    %110 = arith.addf %109, %17 : vector<8x32xf32>
    %cst_61 = arith.constant 0.000000e+00 : f32
    %111 = vector.broadcast %cst_61 : f32 to vector<8x32xf32>
    %112 = arith.maximumf %110, %111 : vector<8x32xf32>
    %cst_62 = arith.constant dense<0.000000e+00> : vector<8x128xf32>
    %113 = tpu.matmul %112, %35, %cst_62 {dimension_numbers = #tpu.dot_dimension_numbers<[1], [0], [0], [1], [0, 0, 1, 1], [], []>} : vector<8x32xf32>, vector<32x128xf32>, vector<8x128xf32> -> vector<8x128xf32>
    %114 = arith.addf %113, %38 : vector<8x128xf32>
    %c0_63 = arith.constant 0 : index
    %c3 = arith.constant 3 : index
    %c0_64 = arith.constant 0 : index
    %115 = vector.load %arg13[%c0_63, %c3, %c0_64] : memref<8x4x128xf32, #tpu.memory_space<vmem>>, vector<8x1x128xf32>
    %116 = vector.shape_cast %115 : vector<8x1x128xf32> to vector<8x128xf32>
    %117 = vector.shape_cast %114 : vector<8x128xf32> to vector<8x1x128xf32>
    tpu.vector_store %arg13[%c0_63, %c3, %c0_64], %117 {strides = array<i32>} : memref<8x4x128xf32, #tpu.memory_space<vmem>>, vector<8x1x128xf32>,
    return
  }
  func.func @transform_0(%arg0: i32) -> (i32, i32, i32) {
    %c0_i32 = arith.constant 0 : i32
    %c0_i32_0 = arith.constant 0 : i32
    %c0_i32_1 = arith.constant 0 : i32
    return %arg0, %c0_i32, %c0_i32_0 : i32, i32, i32
  }
  func.func @transform_1(%arg0: i32) -> (i32, i32) {
    %c0_i32 = arith.constant 0 : i32
    %c0_i32_0 = arith.constant 0 : i32
    return %arg0, %c0_i32 : i32, i32
  }
  func.func @transform_2(%arg0: i32) -> (i32, i32) {
    %c0_i32 = arith.constant 0 : i32
    %c0_i32_0 = arith.constant 0 : i32
    %c0_i32_1 = arith.constant 0 : i32
    return %c0_i32, %c0_i32_0 : i32, i32
  }
  func.func @transform_3(%arg0: i32) -> (i32, i32) {
    %c0_i32 = arith.constant 0 : i32
    %c0_i32_0 = arith.constant 0 : i32
    %c0_i32_1 = arith.constant 0 : i32
    return %c0_i32, %c0_i32_0 : i32, i32
  }
  func.func @transform_4(%arg0: i32) -> (i32, i32) {
    %c0_i32 = arith.constant 0 : i32
    %c0_i32_0 = arith.constant 0 : i32
    %c0_i32_1 = arith.constant 0 : i32
    return %c0_i32, %c0_i32_0 : i32, i32
  }
  func.func @transform_5(%arg0: i32) -> (i32, i32) {
    %c0_i32 = arith.constant 0 : i32
    %c0_i32_0 = arith.constant 0 : i32
    %c0_i32_1 = arith.constant 0 : i32
    return %c0_i32, %c0_i32_0 : i32, i32
  }
  func.func @transform_6(%arg0: i32) -> (i32, i32) {
    %c0_i32 = arith.constant 0 : i32
    %c0_i32_0 = arith.constant 0 : i32
    %c0_i32_1 = arith.constant 0 : i32
    return %c0_i32, %c0_i32_0 : i32, i32
  }
  func.func @transform_7(%arg0: i32) -> (i32, i32) {
    %c0_i32 = arith.constant 0 : i32
    %c0_i32_0 = arith.constant 0 : i32
    %c0_i32_1 = arith.constant 0 : i32
    return %c0_i32, %c0_i32_0 : i32, i32
  }
  func.func @transform_8(%arg0: i32) -> (i32, i32) {
    %c0_i32 = arith.constant 0 : i32
    %c0_i32_0 = arith.constant 0 : i32
    %c0_i32_1 = arith.constant 0 : i32
    return %c0_i32, %c0_i32_0 : i32, i32
  }
  func.func @transform_9(%arg0: i32) -> (i32, i32) {
    %c0_i32 = arith.constant 0 : i32
    %c0_i32_0 = arith.constant 0 : i32
    %c0_i32_1 = arith.constant 0 : i32
    return %c0_i32, %c0_i32_0 : i32, i32
  }
  func.func @transform_10(%arg0: i32) -> (i32, i32) {
    %c0_i32 = arith.constant 0 : i32
    %c0_i32_0 = arith.constant 0 : i32
    %c0_i32_1 = arith.constant 0 : i32
    return %c0_i32, %c0_i32_0 : i32, i32
  }
  func.func @transform_11(%arg0: i32) -> (i32, i32) {
    %c0_i32 = arith.constant 0 : i32
    %c0_i32_0 = arith.constant 0 : i32
    %c0_i32_1 = arith.constant 0 : i32
    return %c0_i32, %c0_i32_0 : i32, i32
  }
  func.func @transform_12(%arg0: i32) -> (i32, i32, i32) {
    %c0_i32 = arith.constant 0 : i32
    %c0_i32_0 = arith.constant 0 : i32
    %c0_i32_1 = arith.constant 0 : i32
    return %arg0, %c0_i32, %c0_i32_0 : i32, i32, i32
  }
}

</mosaic_0001>

<bundles_post_ra>
// kernel: tpu_custom_call.1
= control target key start
LH: loop header
LB: loop body
LE: loop exit
PB: predicated region body
PF: predicated region fallthrough
CT: control target
= control target key end

     0   :  { %17 = vsyncpa [#allocation3], 0  ;;  %s2555_s0 = inlined_call_operand.vmem [shape: f32[8,4,32], index: 0, kind: input, shape index: {}]   ;;  %s2556_s1 = inlined_call_operand.hbm [shape: f32[8,32], index: 1, kind: input, shape index: {}]   ;;  %s2557_s2 = inlined_call_operand.hbm [shape: f32[4,16], index: 2, kind: input, shape index: {}]   ;;  %s2558_s3 = inlined_call_operand.hbm [shape: f32[4,32], index: 3, kind: input, shape index: {}]   ;;  %s2559_s4 = inlined_call_operand.vmem [shape: f32[32,16], index: 4, kind: input, shape index: {}]   ;;  %s2560_s5 = inlined_call_operand.vmem [shape: f32[1,16], index: 5, kind: input, shape index: {}]   ;;  %s2561_s6 = inlined_call_operand.hbm [shape: f32[16,32], index: 6, kind: input, shape index: {}]   ;;  %s2562_s7 = inlined_call_operand.vmem [shape: f32[32,32], index: 7, kind: input, shape index: {}]   ;;  %s2563_s8 = inlined_call_operand.hbm [shape: f32[32,32], index: 8, kind: input, shape index: {}]   ;;  %s2564_s9 = inlined_call_operand.vmem [shape: f32[1,32], index: 9, kind: input, shape index: {}]   ;;  %s2565_s10 = inlined_call_operand.hbm [shape: f32[32,128], index: 10, kind: input, shape index: {}]   ;;  %s2566_s11 = inlined_call_operand.vmem [shape: f32[1,128], index: 11, kind: input, shape index: {}]   ;;  %s2567_s12 = inlined_call_operand.hbm [shape: f32[8,4,128], index: 12, kind: output, shape index: {}]  }
   0x1   :  { %18 = vsyncpa [#allocation6], 0 }
   0x2   :  { %19 = vsyncpa [#allocation9], 0 }
   0x3   :  { %20 = vsyncpa [#allocation12], 0 }
   0x4   :  { %21 = vsyncpa [#allocation4], 0  ;;  %s2087_s21 = smov [#allocation5]   ;;  %s2088_s23 = smov [#allocation8]  }
   0x5   :  { %s40_s22 = sshll.u32 %s2087_s21, 4  ;;  %s63_s24 = sshll.u32 %s2088_s23, 4  ;;  %s41_s22 = int_to_ptr.vmem [resolvable:$true] %s40_s22  ;;  %s2168_s24 = int_to_ptr.vmem [resolvable:$true] %s63_s24 }
   0x6   :  { %s1923_s27 = scalar_lea.hbm %s2557_s2, 64 }
   0x7   :  { %p1924_p0 = scmp.ne.s32.totalorder %s2557_s2, %s1923_s27  ;;  %p1927_p1 = scmp.lt.u32.totalorder %s1923_s27, %s2557_s2 }
   0x9   :  { %p1929_p2 = pnand %p1927_p1, %p1924_p0 }
   0xb   :  { %1932 = shalt.err (!%p1929_p2)
}
   0xc   :  { %s1933_s14 = scalar_lea.vmem %s41_s22, 64  ;;  %p1938_p4 = scmp.lt.s32.totalorder %s41_s22, %s41_s22 }
   0xd   :  { %p1934_p3 = scmp.ne.s32.totalorder %s41_s22, %s1933_s14  ;;  %p1939_p5 = scmp.lt.s32.totalorder %s1933_s14, %s1933_s14 }
   0xf   :  { %p1940_p6 = por %p1939_p5, %p1938_p4 }
  0x11   :  { %p1941_p7 = pnand %p1940_p6, %p1934_p3 }
  0x13   :  { %1944 = shalt.err (!%p1941_p7)
}
  0x14   :  { %43 = dma.hbm_to_vmem [thread:$0]  %s2557_s2, 64, %s41_s22, [#allocation6]  }
  0x15   :  { %s1945_s19 = scalar_lea.hbm %s2561_s6, 256 }
  0x16   :  { %p1946_p8 = scmp.ne.s32.totalorder %s2561_s6, %s1945_s19  ;;  %p1949_p9 = scmp.lt.u32.totalorder %s1945_s19, %s2561_s6 }
  0x18   :  { %p1951_p10 = pnand %p1949_p9, %p1946_p8 }
  0x1a   :  { %1954 = shalt.err (!%p1951_p10)
}
  0x1b   :  { %s1955_s26 = scalar_lea.vmem %s2168_s24, 256  ;;  %p1960_p12 = scmp.lt.s32.totalorder %s2168_s24, %s2168_s24 }
  0x1c   :  { %p1956_p11 = scmp.ne.s32.totalorder %s2168_s24, %s1955_s26  ;;  %p1961_p13 = scmp.lt.s32.totalorder %s1955_s26, %s1955_s26 }
  0x1e   :  { %p1962_p0 = por %p1961_p13, %p1960_p12 }
  0x20   :  { %p1963_p1 = pnand %p1962_p0, %p1956_p11 }
  0x22   :  { %1966 = shalt.err (!%p1963_p1)
}
  0x23   :  { %s2089_s2 = smov 128   ;;  %s2090_s22 = smov 8  }
  0x24   :  { %69 = dma.hbm_to_vmem [thread:$0]  %s2561_s6, 256, %s2168_s24, [#allocation9], %s2089_s2, %s2089_s2, %s2090_s22  }
  0x25   :  { %s2091_s29 = smov [#allocation2]   ;;  %s2092_s13 = smov [#allocation7]  }
  0x26   :  { %s30_s30 = sshll.u32 %s2091_s29, 4  ;;  %s50_s14 = sshll.u32 %s2092_s13, 4  ;;  %s31_s30 = int_to_ptr.vmem [resolvable:$true] %s30_s30  ;;  %s51_s14 = int_to_ptr.vmem [resolvable:$true] %s50_s14 }
  0x27   :  { %s1967_s17 = scalar_lea.hbm %s2556_s1, 128 }
  0x28   :  { %p1968_p2 = scmp.ne.s32.totalorder %s2556_s1, %s1967_s17  ;;  %p1971_p3 = scmp.lt.u32.totalorder %s1967_s17, %s2556_s1 }
  0x2a   :  { %p1973_p4 = pnand %p1971_p3, %p1968_p2 }
  0x2c   :  { %1976 = shalt.err (!%p1973_p4)
}
  0x2d   :  { %s1977_s6 = scalar_lea.vmem %s31_s30, 128  ;;  %p1982_p6 = scmp.lt.s32.totalorder %s31_s30, %s31_s30 }
  0x2e   :  { %p1978_p5 = scmp.ne.s32.totalorder %s31_s30, %s1977_s6  ;;  %p1983_p7 = scmp.lt.s32.totalorder %s1977_s6, %s1977_s6 }
  0x30   :  { %p1984_p8 = por %p1983_p7, %p1982_p6 }
  0x32   :  { %p1985_p9 = pnand %p1984_p8, %p1978_p5 }
  0x34   :  { %1988 = shalt.err (!%p1985_p9)
}
  0x35   :  { %33 = dma.hbm_to_vmem [thread:$0]  %s2556_s1, 128, %s31_s30, [#allocation3]  }
  0x36   :  { %s1989_s27 = scalar_lea.hbm %s2558_s3, 64 }
  0x37   :  { %p1990_p10 = scmp.ne.s32.totalorder %s2558_s3, %s1989_s27  ;;  %p1993_p11 = scmp.lt.u32.totalorder %s1989_s27, %s2558_s3 }
  0x39   :  { %p1995_p12 = pnand %p1993_p11, %p1990_p10 }
  0x3b   :  { %1998 = shalt.err (!%p1995_p12)
}
  0x3c   :  { %s1999_s16 = scalar_lea.vmem %s51_s14, 64  ;;  %p2004_p0 = scmp.lt.s32.totalorder %s51_s14, %s51_s14 }
  0x3d   :  { %p2000_p13 = scmp.ne.s32.totalorder %s51_s14, %s1999_s16  ;;  %p2005_p1 = scmp.lt.s32.totalorder %s1999_s16, %s1999_s16 }
  0x3f   :  { %p2006_p2 = por %p2005_p1, %p2004_p0 }
  0x41   :  { %p2007_p3 = pnand %p2006_p2, %p2000_p13 }
  0x43   :  { %2010 = shalt.err (!%p2007_p3)
}
  0x44   :  { %53 = dma.hbm_to_vmem [thread:$0]  %s2558_s3, 64, %s51_s14, [#allocation6]  }
  0x45   :  { %s2093_s17 = smov [#allocation10]   ;;  %s2094_s19 = smov [#allocation11]  }
  0x46   :  { %s77_s18 = sshll.u32 %s2093_s17, 4  ;;  %s91_s20 = sshll.u32 %s2094_s19, 4  ;;  %s78_s18 = int_to_ptr.vmem [resolvable:$true] %s77_s18  ;;  %s2226_s20 = int_to_ptr.vmem [resolvable:$true] %s91_s20 }
  0x47   :  { %s2011_s24 = scalar_lea.hbm %s2563_s8, 512 }
  0x48   :  { %p2012_p4 = scmp.ne.s32.totalorder %s2563_s8, %s2011_s24  ;;  %p2015_p5 = scmp.lt.u32.totalorder %s2011_s24, %s2563_s8 }
  0x4a   :  { %p2017_p6 = pnand %p2015_p5, %p2012_p4 }
  0x4c   :  { %2020 = shalt.err (!%p2017_p6)
}
  0x4d   :  { %s2021_s3 = scalar_lea.vmem %s78_s18, 512  ;;  %p2026_p8 = scmp.lt.s32.totalorder %s78_s18, %s78_s18 }
  0x4e   :  { %p2022_p7 = scmp.ne.s32.totalorder %s78_s18, %s2021_s3  ;;  %p2027_p9 = scmp.lt.s32.totalorder %s2021_s3, %s2021_s3 }
  0x50   :  { %p2028_p10 = por %p2027_p9, %p2026_p8 }
  0x52   :  { %p2029_p11 = pnand %p2028_p10, %p2022_p7 }
  0x54   :  { %2032 = shalt.err (!%p2029_p11)
}
  0x55   :  { %83 = dma.hbm_to_vmem [thread:$0]  %s2563_s8, 512, %s78_s18, [#allocation9], %s2089_s2, %s2089_s2, %s2090_s22  }
  0x56   :  { %s2033_s15 = scalar_lea.hbm %s2565_s10, 512 }
  0x57   :  { %p2034_p12 = scmp.ne.s32.totalorder %s2565_s10, %s2033_s15  ;;  %p2037_p13 = scmp.lt.u32.totalorder %s2033_s15, %s2565_s10 }
  0x59   :  { %p2039_p0 = pnand %p2037_p13, %p2034_p12 }
  0x5b   :  { %2042 = shalt.err (!%p2039_p0)
}
  0x5c   :  { %s2043_s19 = scalar_lea.vmem %s2226_s20, 512  ;;  %p2048_p2 = scmp.lt.s32.totalorder %s2226_s20, %s2226_s20 }
  0x5d   :  { %p2044_p1 = scmp.ne.s32.totalorder %s2226_s20, %s2043_s19  ;;  %p2049_p3 = scmp.lt.s32.totalorder %s2043_s19, %s2043_s19 }
  0x5f   :  { %p2050_p4 = por %p2049_p3, %p2048_p2 }
  0x61   :  { %p2051_p5 = pnand %p2050_p4, %p2044_p1 }
  0x63   :  { %2054 = shalt.err (!%p2051_p5)
}
  0x64   :  { %97 = dma.hbm_to_vmem [thread:$0]  %s2565_s10, 512, %s2226_s20, [#allocation12], %s2089_s2, %s2089_s2, %s2090_s22  }
  0x65   :  { %2077 = dma.done.wait [#allocation3], 128  }
  0x66   :  { %2078 = vsyncadd [#allocation3], 4294967168 }
  0x67   :  { %2079 = dma.done.wait [#allocation6], 128  }
  0x68   :  { %2080 = vsyncadd [#allocation6], 4294967168 }
  0x69   :  { %2081 = dma.done.wait [#allocation9], 768  }
  0x6a   :  { %2082 = vsyncadd [#allocation9], 4294966528 }
  0x6b   :  { %2083 = dma.done.wait [#allocation12], 512  }
  0x6c   :  { %2084 = vsyncadd [#allocation12], 4294966784  ;;  %v2095_v0 = vmov 0.0|0.0   ;;  %vm2096_vm0 = vmmov 0   ;;  %v2097_v1 = vmov 0.0   ;;  %v119_v2 = vld [vmem:[%s2559_s4] sm:$0xff] }
  0x6d   :  { %1844 = vmatprep.subr.bf16.mxu0 %v2095_v0  ;;  %1720 = vmatprep.mubr.msk.f32.mxu0 %vm2096_vm0, %v2097_v1  ;;  %v120_v3 = vld [vmem:[%s2559_s4 + $0x8] sm:$0xff]  ;;  %v121_v4 = vld [vmem:[%s2559_s4 + $0x10] sm:$0xff]  ;;  %v122_v6 = vld [vmem:[%s2559_s4 + $0x18] sm:$0xff]  ;;  %vm130_vm1 = vcmask 261120   ;;  %vm392_vm2 = vcmask 1041409   ;;  %vm395_vm3 = vcmask 1042434  }
  0x6e   :  { %1850 = vmatprep.subr.bf16.mxu1 %v2095_v0  ;;  %1727 = vmatprep.mubr.msk.f32.mxu1 %vm2096_vm0, %v2097_v1  ;;  %v1845_v5 = vpack.c.bf16 %v120_v3, %v119_v2  ;;  %v1848_v7 = vpack.c.bf16 %v122_v6, %v121_v4  ;;  %v118_v8 = vld [vmem:[#allocation7] sm:$0xf]  ;;  %v379_v9 = vld [vmem:[#allocation10] sm:$0xff]  ;;  %v210_v12 = vld [vmem:[#allocation8] sm:$0xff]  ;;  %vm398_vm4 = vcmask 1043459   ;;  %vm401_vm5 = vcmask 1044484  }
  0x6f   :  { %v380_v10 = vld [vmem:[#allocation10 + $0x8] sm:$0xff]  ;;  %v211_v13 = vld [vmem:[#allocation8 + $0x8] sm:$0xff]  ;;  %v2291_v14 = vld [vmem:[%s2555_s0 + $0x4] sm:$0xf]  ;;  %vm404_vm6 = vcmask 1045509   ;;  %vm407_vm7 = vcmask 1046534  }
  0x70   :  { %1846 = vmatpush3.bf16.msra.mxu0 %v1845_v5  ;;  %v2286_v11 = vpack.c.bf16 %v380_v10, %v379_v9  ;;  %v1851_v15 = vpack.c.bf16 %v211_v13, %v210_v12  ;;  %v2296_v16 = vld [vmem:[%s2555_s0 + $0x8] sm:$0xf]  ;;  %v391_v17 = vrot.slane %v2291_v14, 7  ;;  %v2303_v18 = vld [vmem:[%s2555_s0] sm:$0xf]  ;;  %v381_v21 = vld [vmem:[#allocation10 + $0x10] sm:$0xff] }
  0x71   :  { %1847 = vmatprep.subr.bf16.mxu0 %v2095_v0  ;;  %v2308_v19 = vld [vmem:[%s2555_s0 + $0xc] sm:$0xf]  ;;  %v394_v20 = vrot.slane %v2296_v16, 6  ;;  %v382_v22 = vld [vmem:[#allocation10 + $0x18] sm:$0xff]  ;;  %v2315_v23 = vld [vmem:[%s2555_s0 + $0x10] sm:$0xf] }
  0x72   :  { %1852 = vmatpush3.bf16.msra.mxu1 %v1851_v15  ;;  %v393_v24 = vsel %vm392_vm2, %v391_v17, %v2303_v18  ;;  %v397_v25 = vrot.slane %v2308_v19, 5  ;;  %v2321_v26 = vpack.c.bf16 %v382_v22, %v381_v21  ;;  %v2327_v28 = vld [vmem:[%s2555_s0 + $0x14] sm:$0xf]  ;;  %v2332_v29 = vld [vmem:[%s2555_s0 + $0x18] sm:$0xf]  ;;  %v400_v31 = vrot.slane %v2315_v23, 4 }
  0x73   :  { %1853 = vmatprep.subr.bf16.mxu1 %v2095_v0  ;;  %v396_v27 = vsel %vm395_vm3, %v394_v20, %v393_v24  ;;  %v2340_v32 = vld [vmem:[%s2555_s0 + $0x1c] sm:$0xf]  ;;  %v403_v33 = vrot.slane %v2327_v28, 3  ;;  %v406_v34 = vrot.slane %v2332_v29, 2  ;;  %vm410_vm8 = vcmask 1047559   ;;  %v287_v43 = vld [vmem:[%s2562_s7] sm:$0xff] }
  0x74   :  { %1849 = vmatpush3.bf16.msra.mxu0 %v1848_v7  ;;  %v399_v30 = vsel %vm398_vm4, %v397_v25, %v396_v27  ;;  %v409_v36 = vrot.slane %v2340_v32, 1  ;;  %v484_v40 = vrot.slane %v2303_v18, 1  ;;  %v1617_v41 = vld [vmem:[%s2560_s5] ss:$0 sm:$0xff]  ;;  %v288_v44 = vld [vmem:[%s2562_s7 + $0x8] sm:$0xff]  ;;  %v486_v45 = vrot.slane %v2296_v16, 7 }
  0x75   :  { %1859 = vmatprep.subr.bf16.mxu0 %v2095_v0  ;;  %v402_v35 = vsel %vm401_vm5, %v400_v31, %v399_v30  ;;  %v204_v49 = vld [vmem:[#allocation5] sm:$0xf]  ;;  %vm208_vm9 = vcmask 1043456   ;;  %vm212_vm10 = vcmask 130048   ;;  %v1854_v51 = vpack.c.bf16 %v288_v44, %v287_v43  ;;  %v289_v53 = vld [vmem:[%s2562_s7 + $0x10] sm:$0xff]  ;;  %v290_v54 = vld [vmem:[%s2562_s7 + $0x18] sm:$0xff] }
  0x76   :  { %v405_v37 = vsel %vm404_vm6, %v403_v33, %v402_v35  ;;  %v485_v48 = vsel %vm392_vm2, %v2291_v14, %v484_v40  ;;  %v488_v52 = vrot.slane %v2308_v19, 6  ;;  %v490_v57 = vrot.slane %v2315_v23, 5  ;;  %v286_v62 = vld [vmem:[#allocation2] sm:$0xff] }
  0x77   :  { %1721 = vmatmul.mubr.msk.f32.vlgmr.msra.gmra.mrb[0].mxu0 %vm130_vm1, %v118_v8  ;;  %v408_v38 = vsel %vm407_vm7, %v406_v34, %v405_v37  ;;  %v487_v55 = vsel %vm395_vm3, %v486_v45, %v485_v48  ;;  %v1857_v58 = vpack.c.bf16 %v290_v54, %v289_v53  ;;  %v492_v60 = vrot.slane %v2327_v28, 4 }
  0x78   :  { %1749 = vmatprep.mubr.msk.f32.mxu0 %vm2096_vm0, %v2097_v1  ;;  %1861 = vmatpush3.bf16.msra.mxu0 %v2286_v11  ;;  %v411_v39 = vsel %vm410_vm8, %v409_v36, %v408_v38  ;;  %v489_v59 = vsel %vm398_vm4, %v488_v52, %v487_v55  ;;  %v494_v63 = vrot.slane %v2332_v29, 3  ;;  %v496_v3 = vrot.slane %v2340_v32, 2  ;;  %v742_v38 = vld [vmem:[#allocation11] sm:$0xff] }
  0x79   :  { %1862 = vmatprep.subr.bf16.mxu0 %v2095_v0  ;;  %v491_v61 = vsel %vm401_vm5, %v490_v57, %v489_v59  ;;  %v656_v6 = vrot.slane %v2303_v18, 3  ;;  %v657_v7 = vrot.slane %v2291_v14, 2  ;;  %v659_v8 = vrot.slane %v2296_v16, 1 }
  0x7a   :  { %v493_v2 = vsel %vm404_vm6, %v492_v60, %v491_v61  ;;  %v664_v13 = vrot.slane %v2327_v28, 6  ;;  %v666_v17 = vrot.slane %v2332_v29, 5  ;;  %v570_v20 = vrot.slane %v2303_v18, 2  ;;  %v2472_v60 = vld [vmem:[%s2566_s11] ss:$0 sm:$0xff]  ;;  %s2100_s11 = smov [#allocation13]  }
  0x7b   :  { %v495_v4 = vsel %vm407_vm7, %v494_v63, %v493_v2  ;;  %v658_v9 = vsel %vm392_vm2, %v657_v7, %v656_v6  ;;  %v668_v22 = vrot.slane %v2340_v32, 4  ;;  %v571_v24 = vrot.slane %v2291_v14, 1  ;;  %s1602_s25 = sshll.u32 %s2100_s11, 4  ;;  %s1603_s25 = int_to_ptr.vmem [resolvable:$true] %s1602_s25 }
  0x7c   :  { %1864 = vmatpush3.bf16.msra.mxu0 %v2321_v26  ;;  %v497_v5 = vsel %vm410_vm8, %v496_v3, %v495_v4  ;;  %v660_v10 = vsel %vm395_vm3, %v659_v8, %v658_v9  ;;  %v576_v31 = vrot.slane %v2315_v23, 6  ;;  %v578_v33 = vrot.slane %v2327_v28, 5  ;;  %s2055_s26 = scalar_lea.vmem %s1603_s25, 512  ;;  %p2060_p7 = scmp.lt.s32.totalorder %s1603_s25, %s1603_s25 }
  0x7d   :  { %1871 = vmatprep.subr.bf16.mxu0 %v2095_v0  ;;  %v661_v12 = vsel %vm398_vm4, %v2308_v19, %v660_v10  ;;  %v572_v30 = vsel %vm392_vm2, %v571_v24, %v570_v20  ;;  %v580_v14 = vrot.slane %v2332_v29, 4  ;;  %v582_v35 = vrot.slane %v2340_v32, 3  ;;  %v744_v29 = vld [vmem:[#allocation11 + $0x10] sm:$0xff]  ;;  %v745_v32 = vld [vmem:[#allocation11 + $0x18] sm:$0xff]  ;;  %p2056_p6 = scmp.ne.s32.totalorder %s1603_s25, %s2055_s26  ;;  %p2061_p8 = scmp.lt.s32.totalorder %s2055_s26, %s2055_s26 }
  0x7e   :  { %v573_v18 = vsel %vm395_vm3, %v2296_v16, %v572_v30  ;;  %v2098_v57 = vmov 1966171168  }
  0x7f   :  { %1750 = vmatmul.mubr.msk.f32.vlgmr.msra.gmra.mrb[2].mxu0 %vm130_vm1, %v411_v39  ;;  %v743_v39 = vld [vmem:[#allocation11 + $0x8] sm:$0xff]  ;;  %p2062_p9 = por %p2061_p8, %p2060_p7 }
  0x80   :  { %1873 = vmatpush3.bf16.msra.mxu0 %v2286_v11  ;;  %1771 = vmatprep.mubr.msk.f32.mxu0 %vm2096_vm0, %v2097_v1  ;;  %v2437_v28 = vpack.c.bf16 %v743_v39, %v742_v38  ;;  %v2099_v38 = vmov 1.0  }
  0x81   :  { %1874 = vmatprep.subr.bf16.mxu0 %v2095_v0  ;;  %p2063_p10 = pnand %p2062_p9, %p2056_p6 }
  0x84   :  { %1876 = vmatpush3.bf16.msra.mxu0 %v2321_v26 }
  0x85   :  { %1883 = vmatprep.subr.bf16.mxu0 %v2095_v0 }
 0x14a   :  { %v200_v42 = vpop.f32.mrb[0].mxu0 }
 0x14b   :  { %v201_v46 = vadd.f32 %v1617_v41, %v200_v42  ;;  %v1722_v47 = vpop.f32.mrb[1].mxu0  ;;  %v2445_v41 = vpack.c.bf16 %v745_v32, %v744_v29  ;;  %v753_v42 = vlaneseq }
 0x14d   :  { %v206_v50 = vrot.slane %v201_v46, 4  ;;  %v756_v43 = vshrl.u32 %v753_v42, 7  ;;  %v2483_v20 = vand.u32 127, %v753_v42 }
 0x14f   :  { %v209_v56 = vsel %vm208_vm9, %v204_v49, %v206_v50  ;;  %v757_v44 = vsub.s32 0, %v756_v43  ;;  %v1620_v49 = vld [vmem:[%s2564_s9] ss:$0 sm:$0xff] }
 0x150   :  { %1728 = vmatmul.mubr.msk.f32.vlgmr.msra.gmra.mrb[0].mxu1 %vm212_vm10, %v209_v56 }
 0x151   :  { %1855 = vmatpush3.bf16.msra.mxu1 %v1854_v51  ;;  %1738 = vmatprep.mubr.msk.f32.mxu1 %vm2096_vm0, %v2097_v1 }
 0x152   :  { %1856 = vmatprep.subr.bf16.mxu1 %v2095_v0 }
 0x155   :  { %1858 = vmatpush3.bf16.msra.mxu1 %v1857_v58  ;;  %v838_v58 = vunpack.c.l.s4 %v2098_v57 }
 0x156   :  { %1865 = vmatprep.subr.bf16.mxu1 %v2095_v0 }
 0x157   :  { %v839_v59 = vunpack.c.0.s8 %v838_v58 }
 0x158   :  { %1739 = vmatmul.mubr.msk.f32.vlgmr.msra.gmra.mrb[2].mxu1 %vm130_vm1, %v286_v62 }
 0x159   :  { %1867 = vmatpush3.bf16.msra.mxu1 %v2286_v11  ;;  %1760 = vmatprep.mubr.msk.f32.mxu1 %vm2096_vm0, %v2097_v1  ;;  %v2474_v61 = vsub.s32 %v839_v59, %v756_v43 }
 0x15a   :  { %1868 = vmatprep.subr.bf16.mxu1 %v2095_v0 }
 0x15d   :  { %1870 = vmatpush3.bf16.msra.mxu1 %v2321_v26 }
 0x15e   :  { %1877 = vmatprep.subr.bf16.mxu1 %v2095_v0 }
 0x160   :  { %1761 = vmatmul.mubr.msk.f32.vlgmr.msra.gmra.mrb[4].mxu1 %vm130_vm1, %v497_v5 }
 0x161   :  { %1879 = vmatpush3.bf16.msra.mxu1 %v2286_v11  ;;  %1782 = vmatprep.mubr.msk.f32.mxu1 %vm2096_vm0, %v2097_v1  ;;  %v662_v11 = vrot.slane %v2315_v23, 7 }
 0x162   :  { %1880 = vmatprep.subr.bf16.mxu1 %v2095_v0 }
 0x163   :  { %v663_v15 = vsel %vm401_vm5, %v662_v11, %v661_v12 }
 0x164   :  { %v665_v21 = vsel %vm404_vm6, %v664_v13, %v663_v15 }
 0x165   :  { %1882 = vmatpush3.bf16.msra.mxu1 %v2321_v26  ;;  %v667_v25 = vsel %vm407_vm7, %v666_v17, %v665_v21  ;;  %v574_v26 = vrot.slane %v2308_v19, 7  ;;  %v480_v19 = vpop.f32.mrb[2].mxu0 }
 0x166   :  { %1796 = vmatprep.subr.mxu1 %v2097_v1  ;;  %v669_v27 = vsel %vm410_vm8, %v668_v22, %v667_v25  ;;  %v1751_v37 = vpop.f32.mrb[3].mxu0 }
 0x167   :  { %v575_v34 = vsel %vm398_vm4, %v574_v26, %v573_v18 }
 0x168   :  { %1783 = vmatmul.mubr.msk.f32.vlgmr.msra.gmra.mrb[6].mxu1 %vm130_vm1, %v669_v27  ;;  %v577_v36 = vsel %vm401_vm5, %v576_v31, %v575_v34 }
 0x169   :  { %1798 = vmatprep.mubr.msk.f32.mxu1 %vm2096_vm0, %v2097_v1  ;;  %v579_v23 = vsel %vm404_vm6, %v578_v33, %v577_v36 }
 0x16a   :  { %v581_v16 = vsel %vm407_vm7, %v580_v14, %v579_v23 }
 0x16b   :  { %v583_v40 = vsel %vm410_vm8, %v582_v35, %v581_v16 }
 0x16c   :  { %1772 = vmatmul.mubr.msk.f32.vlgmr.msra.gmra.mrb[4].mxu0 %vm130_vm1, %v583_v40 }
 0x16d   :  { %1885 = vmatpush3.bf16.msra.mxu0 %v2437_v28  ;;  %1793 = vmatprep.mubr.msk.f32.mxu0 %vm2096_vm0, %v2097_v1 }
 0x16e   :  { %1886 = vmatprep.subr.bf16.mxu0 %v2095_v0 }
 0x171   :  { %1888 = vmatpush3.bf16.msra.mxu0 %v2445_v41 }
 0x172   :  { %1889 = vmatprep.subr.bf16.mxu0 %v2095_v0 }
 0x223   :  { %v2449_v45 = vpop.f32.mrb[0].mxu1 }
 0x224   :  { %v1729_v46 = vpop.f32.mrb[1].mxu1  ;;  %1797 = vmatpush3.msra.mxu1 %v2449_v45  ;;  %v758_v47 = vrot.slane %v2449_v45, %v757_v44 }
 0x225   :  { %1812 = vmatprep.subr.mxu1 %v2097_v1 }
 0x226   :  { %v759_v48 = vadd.f32 %v758_v47, %v480_v19 }
 0x22b   :  { %v367_v50 = vpop.f32.mrb[2].mxu1 }
 0x22c   :  { %v2457_v51 = vadd.f32 %v1620_v49, %v367_v50  ;;  %v1740_v52 = vpop.f32.mrb[3].mxu1 }
 0x22e   :  { %v760_v53 = vadd.f32 %v759_v48, %v2457_v51 }
 0x230   :  { %v761_v54 = vmax.f32 %v760_v53, 0.0 }
 0x232   :  { %1794 = vmatmul.mubr.msk.f32.vlgmr.msra.gmra.mrb[6].mxu0 %vm130_vm1, %v761_v54 }
 0x233   :  { %1891 = vmatpush3.bf16.msra.mxu0 %v2437_v28  ;;  %1809 = vmatprep.mubr.msk.f32.mxu0 %vm2096_vm0, %v2097_v1  ;;  %v566_v18 = vpop.f32.mrb[4].mxu1 }
 0x234   :  { %1892 = vmatprep.subr.bf16.mxu0 %v2095_v0  ;;  %v1762_v33 = vpop.f32.mrb[5].mxu1 }
 0x237   :  { %1894 = vmatpush3.bf16.msra.mxu0 %v2445_v41 }
 0x238   :  { %1901 = vmatprep.subr.bf16.mxu0 %v2095_v0 }
 0x23b   :  { %v2486_v34 = vpop.f32.mrb[6].mxu1 }
 0x23c   :  { %v1784_v14 = vpop.f32.mrb[7].mxu1 }
 0x23f   :  { %v2467_v55 = vpop.f32.mrb[4].mxu0 }
 0x240   :  { %v1773_v56 = vpop.f32.mrb[5].mxu0 }
 0x305   :  { %v831_v62 = vpop.f32.mrb[6].mxu0 }
 0x306   :  { %v832_v63 = vadd.f32 %v2472_v60, %v831_v62  ;;  %v1795_v2 = vpop.f32.mrb[7].mxu0 }
 0x308   :  { %v836_v3 = vcombine.high %v832_v63, %v832_v63  ;;  %v843_v4 = vrot.slane %v832_v63, %v2474_v61  ;;  %901 = vmax.xlane.f32.xlu0 %v832_v63 }
 0x30a   :  { %v850_v5 = vrot.slane %v836_v3, %v2474_v61  ;;  %v851_v6 = vcombine.high %v843_v4, %v843_v4  ;;  %v859_v7 = vrot.slane %v843_v4, %v2474_v61  ;;  %1628 = vst.sshfl [vmem:[#allocation13] sm:$0x1 pattern:$0x73625140] %v843_v4 }
 0x30c   :  { %v852_v8 = vcombine.high %v850_v5, %v850_v5  ;;  %v866_v9 = vrot.slane %v850_v5, %v2474_v61  ;;  %v873_v10 = vrot.slane %v851_v6, %v2474_v61  ;;  %v881_v11 = vcombine.high %v859_v7, %v859_v7  ;;  %1629 = vst.sshfl [vmem:[#allocation13 + $0x4] sm:$0x1 pattern:$0x73625140] %v851_v6 }
 0x30d   :  { %1630 = vst.sshfl [vmem:[#allocation13 + $0x10] sm:$0x1 pattern:$0x73625140] %v850_v5 }
 0x30e   :  { %v880_v12 = vrot.slane %v852_v8, %v2474_v61  ;;  %v882_v13 = vcombine.high %v866_v9, %v866_v9  ;;  %v883_v15 = vcombine.high %v873_v10, %v873_v10  ;;  %895 = vst [vmem:[#allocation13 + $0x8] sm:$0x1] %v881_v11  ;;  %1631 = vst.sshfl [vmem:[#allocation13 + $0x14] sm:$0x1 pattern:$0x73625140] %v852_v8 }
 0x310   :  { %v884_v17 = vcombine.high %v880_v12, %v880_v12  ;;  %896 = vst [vmem:[#allocation13 + $0xc] sm:$0x1] %v883_v15  ;;  %899 = vst [vmem:[#allocation13 + $0x18] sm:$0x1] %v882_v13 }
 0x312   :  { %900 = vst [vmem:[#allocation13 + $0x1c] sm:$0x1] %v884_v17 }
 0x395   :  { %v902_v21 = vpop.xlane.xlu0 %901 }
 0x396   :  { %vm903_vm11 = vcmp.eq.f32.partialorder %v832_v63, %v902_v21 }
 0x397   :  { %v904_v22 = vsel %vm903_vm11, %v2483_v20, 128 }
 0x398   :  { %v906_v24 = vshra.s32 %v904_v22, 16  ;;  %v905_v26 = vand.u32 65535, %v904_v22 }
 0x39a   :  { %v908_v25 = vcvt.s32.f32 %v906_v24  ;;  %v907_v30 = vcvt.s32.f32 %v905_v26 }
 0x39c   :  { %909 = vmin.xlane.f32.xlu0 %v908_v25 }
 0x429   :  { %v910_v27 = vpop.xlane.xlu0 %909 }
 0x42a   :  { %vm911_vm12 = vcmp.eq.f32.partialorder %v908_v25, %v910_v27  ;;  %v916_v35 = vcvt.f32.s32 %v910_v27 }
 0x42b   :  { %v912_v31 = vsel %vm911_vm12, %v907_v30, inf }
 0x42c   :  { %913 = vmin.xlane.f32.xlu1 %v912_v31  ;;  %v917_v36 = vshll.u32 %v916_v35, 16 }
 0x4b9   :  { %v914_v19 = vpop.xlane.xlu1 %913 }
 0x4ba   :  { %v915_v23 = vcvt.f32.s32 %v914_v19 }
 0x4bc   :  { %v918_v37 = vadd.s32 %v917_v36, %v915_v23 }
 0x4be   :  { %vm919_vm13 = vcmp.eq.s32.totalorder %v2483_v20, %v918_v37 }
 0x4bf   :  { %1799 = vmatmul.mubr.msk.f32.vlgmr.msra.gmra.mrb[8].mxu1 %vm919_vm13, %v2099_v38 }
 0x4c0   :  { %1813 = vmatpush3.msra.mxu1 %v2449_v45  ;;  %1814 = vmatprep.mubr.msk.f32.mxu1 %vm2096_vm0, %v2097_v1 }
 0x4c1   :  { %1895 = vmatprep.subr.bf16.mxu1 %v2095_v0 }
 0x592   :  { %v988_v39 = vpop.f32.mrb[8].mxu1 }
 0x593   :  { %v989_v16 = vadd.f32 %v988_v39, %v566_v18  ;;  %v1800_v40 = vpop.f32.mrb[9].mxu1 }
 0x595   :  { %v992_v29 = vadd.f32 %v989_v16, %v2457_v51 }
 0x597   :  { %v993_v32 = vmax.f32 %v992_v29, 0.0 }
 0x599   :  { %1810 = vmatmul.mubr.msk.f32.vlgmr.msra.gmra.mrb[8].mxu0 %vm130_vm1, %v993_v32 }
 0x59a   :  { %1903 = vmatpush3.bf16.msra.mxu0 %v2437_v28  ;;  %1841 = vmatprep.mubr.msk.f32.mxu0 %vm2096_vm0, %v2097_v1 }
 0x59b   :  { %1904 = vmatprep.subr.bf16.mxu0 %v2095_v0 }
 0x59e   :  { %1906 = vmatpush3.bf16.msra.mxu0 %v2445_v41 }
 0x66c   :  { %v1063_v42 = vpop.f32.mrb[8].mxu0 }
 0x66d   :  { %v1064_v43 = vadd.f32 %v2472_v60, %v1063_v42  ;;  %v1811_v44 = vpop.f32.mrb[9].mxu0 }
 0x66f   :  { %v1068_v46 = vcombine.high %v1064_v43, %v1064_v43  ;;  %v1075_v47 = vrot.slane %v1064_v43, %v2474_v61  ;;  %1133 = vmax.xlane.f32.xlu1 %v1064_v43 }
 0x671   :  { %v1082_v48 = vrot.slane %v1068_v46, %v2474_v61  ;;  %v1083_v49 = vcombine.high %v1075_v47, %v1075_v47  ;;  %v1091_v50 = vrot.slane %v1075_v47, %v2474_v61  ;;  %1635 = vst.sshfl [vmem:[#allocation13 + $0x1] sm:$0x1 pattern:$0x73625140] %v1075_v47 }
 0x673   :  { %v1084_v52 = vcombine.high %v1082_v48, %v1082_v48  ;;  %v1098_v53 = vrot.slane %v1082_v48, %v2474_v61  ;;  %v1105_v54 = vrot.slane %v1083_v49, %v2474_v61  ;;  %v1113_v56 = vcombine.high %v1091_v50, %v1091_v50  ;;  %1636 = vst.sshfl [vmem:[#allocation13 + $0x5] sm:$0x1 pattern:$0x73625140] %v1083_v49 }
 0x674   :  { %1637 = vst.sshfl [vmem:[#allocation13 + $0x11] sm:$0x1 pattern:$0x73625140] %v1082_v48 }
 0x675   :  { %v1112_v57 = vrot.slane %v1084_v52, %v2474_v61  ;;  %v1114_v58 = vcombine.high %v1098_v53, %v1098_v53  ;;  %v1115_v59 = vcombine.high %v1105_v54, %v1105_v54  ;;  %1127 = vst [vmem:[#allocation13 + $0x9] sm:$0x1] %v1113_v56  ;;  %1638 = vst.sshfl [vmem:[#allocation13 + $0x15] sm:$0x1 pattern:$0x73625140] %v1084_v52 }
 0x677   :  { %v1116_v62 = vcombine.high %v1112_v57, %v1112_v57  ;;  %1128 = vst [vmem:[#allocation13 + $0xd] sm:$0x1] %v1115_v59  ;;  %1131 = vst [vmem:[#allocation13 + $0x19] sm:$0x1] %v1114_v58 }
 0x679   :  { %1132 = vst [vmem:[#allocation13 + $0x1d] sm:$0x1] %v1116_v62 }
 0x6fc   :  { %v1134_v63 = vpop.xlane.xlu1 %1133 }
 0x6fd   :  { %vm1135_vm14 = vcmp.eq.f32.partialorder %v1064_v43, %v1134_v63 }
 0x6fe   :  { %v1136_v2 = vsel %vm1135_vm14, %v2483_v20, 128 }
 0x6ff   :  { %v1138_v3 = vshra.s32 %v1136_v2, 16  ;;  %v1137_v5 = vand.u32 65535, %v1136_v2 }
 0x701   :  { %v1140_v4 = vcvt.s32.f32 %v1138_v3  ;;  %v1139_v7 = vcvt.s32.f32 %v1137_v5 }
 0x703   :  { %1141 = vmin.xlane.f32.xlu0 %v1140_v4 }
 0x790   :  { %v1142_v6 = vpop.xlane.xlu0 %1141 }
 0x791   :  { %vm1143_vm15 = vcmp.eq.f32.partialorder %v1140_v4, %v1142_v6  ;;  %v1148_v9 = vcvt.f32.s32 %v1142_v6 }
 0x792   :  { %v1144_v8 = vsel %vm1143_vm15, %v1139_v7, inf }
 0x793   :  { %1145 = vmin.xlane.f32.xlu1 %v1144_v8  ;;  %v1149_v11 = vshll.u32 %v1148_v9, 16 }
 0x820   :  { %v1146_v10 = vpop.xlane.xlu1 %1145 }
 0x821   :  { %v1147_v12 = vcvt.f32.s32 %v1146_v10 }
 0x823   :  { %v1150_v13 = vadd.s32 %v1149_v11, %v1147_v12 }
 0x825   :  { %vm1151_vm2 = vcmp.eq.s32.totalorder %v2483_v20, %v1150_v13 }
 0x826   :  { %1815 = vmatmul.mubr.msk.f32.vlgmr.msra.gmra.mrb[10].mxu1 %vm1151_vm2, %v2099_v38 }
 0x827   :  { %1897 = vmatpush3.bf16.msra.mxu1 %v2437_v28  ;;  %1825 = vmatprep.mubr.msk.f32.mxu1 %vm2096_vm0, %v2097_v1 }
 0x828   :  { %1898 = vmatprep.subr.bf16.mxu1 %v2095_v0 }
 0x82b   :  { %1900 = vmatpush3.bf16.msra.mxu1 %v2445_v41 }
 0x82c   :  { %1828 = vmatprep.subr.mxu1 %v2097_v1 }
 0x8f9   :  { %v1220_v15 = vpop.f32.mrb[10].mxu1 }
 0x8fa   :  { %v1221_v17 = vadd.f32 %v1220_v15, %v2467_v55  ;;  %v1816_v21 = vpop.f32.mrb[11].mxu1 }
 0x8fc   :  { %v1224_v22 = vadd.f32 %v1221_v17, %v2457_v51 }
 0x8fe   :  { %v1225_v24 = vmax.f32 %v1224_v22, 0.0 }
 0x900   :  { %1826 = vmatmul.mubr.msk.f32.vlgmr.msra.gmra.mrb[12].mxu1 %vm130_vm1, %v1225_v24 }
 0x901   :  { %1829 = vmatpush3.msra.mxu1 %v2449_v45  ;;  %1830 = vmatprep.mubr.msk.f32.mxu1 %vm2096_vm0, %v2097_v1 }
 0x9d3   :  { %v1295_v28 = vpop.f32.mrb[12].mxu1 }
 0x9d4   :  { %v1296_v0 = vadd.f32 %v2472_v60, %v1295_v28  ;;  %v1827_v41 = vpop.f32.mrb[13].mxu1 }
 0x9d6   :  { %v1300_v25 = vcombine.high %v1296_v0, %v1296_v0  ;;  %v1307_v26 = vrot.slane %v1296_v0, %v2474_v61  ;;  %1365 = vmax.xlane.f32.xlu0 %v1296_v0 }
 0x9d8   :  { %v1314_v55 = vrot.slane %v1300_v25, %v2474_v61  ;;  %v1315_v27 = vcombine.high %v1307_v26, %v1307_v26  ;;  %v1323_v30 = vrot.slane %v1307_v26, %v2474_v61  ;;  %1642 = vst.sshfl [vmem:[#allocation13 + $0x2] sm:$0x1 pattern:$0x73625140] %v1307_v26 }
 0x9da   :  { %v1316_v31 = vcombine.high %v1314_v55, %v1314_v55  ;;  %v1330_v45 = vrot.slane %v1314_v55, %v2474_v61  ;;  %v1337_v18 = vrot.slane %v1315_v27, %v2474_v61  ;;  %v1345_v1 = vcombine.high %v1323_v30, %v1323_v30  ;;  %1643 = vst.sshfl [vmem:[#allocation13 + $0x6] sm:$0x1 pattern:$0x73625140] %v1315_v27 }
 0x9db   :  { %1644 = vst.sshfl [vmem:[#allocation13 + $0x12] sm:$0x1 pattern:$0x73625140] %v1314_v55 }
 0x9dc   :  { %v1344_v33 = vrot.slane %v1316_v31, %v2474_v61  ;;  %v1346_v14 = vcombine.high %v1330_v45, %v1330_v45  ;;  %v1347_v35 = vcombine.high %v1337_v18, %v1337_v18  ;;  %1359 = vst [vmem:[#allocation13 + $0xa] sm:$0x1] %v1345_v1  ;;  %1645 = vst.sshfl [vmem:[#allocation13 + $0x16] sm:$0x1 pattern:$0x73625140] %v1316_v31 }
 0x9de   :  { %v1348_v19 = vcombine.high %v1344_v33, %v1344_v33  ;;  %1360 = vst [vmem:[#allocation13 + $0xe] sm:$0x1] %v1347_v35  ;;  %1363 = vst [vmem:[#allocation13 + $0x1a] sm:$0x1] %v1346_v14 }
 0x9e0   :  { %1364 = vst [vmem:[#allocation13 + $0x1e] sm:$0x1] %v1348_v19 }
 0xa63   :  { %v1366_v36 = vpop.xlane.xlu0 %1365 }
 0xa64   :  { %vm1367_vm0 = vcmp.eq.f32.partialorder %v1296_v0, %v1366_v36 }
 0xa65   :  { %v1368_v23 = vsel %vm1367_vm0, %v2483_v20, 128 }
 0xa66   :  { %v1370_v37 = vshra.s32 %v1368_v23, 16  ;;  %v1369_v16 = vand.u32 65535, %v1368_v23 }
 0xa68   :  { %v1372_v39 = vcvt.s32.f32 %v1370_v37  ;;  %v1371_v29 = vcvt.s32.f32 %v1369_v16 }
 0xa6a   :  { %1373 = vmin.xlane.f32.xlu1 %v1372_v39 }
 0xaf7   :  { %v1374_v40 = vpop.xlane.xlu1 %1373 }
 0xaf8   :  { %vm1375_vm3 = vcmp.eq.f32.partialorder %v1372_v39, %v1374_v40  ;;  %v1380_v42 = vcvt.f32.s32 %v1374_v40 }
 0xaf9   :  { %v1376_v32 = vsel %vm1375_vm3, %v1371_v29, inf }
 0xafa   :  { %1377 = vmin.xlane.f32.xlu0 %v1376_v32  ;;  %v1381_v44 = vshll.u32 %v1380_v42, 16 }
 0xb87   :  { %v1378_v43 = vpop.xlane.xlu0 %1377 }
 0xb88   :  { %v1379_v46 = vcvt.f32.s32 %v1378_v43 }
 0xb8a   :  { %v1382_v47 = vadd.s32 %v1381_v44, %v1379_v46 }
 0xb8c   :  { %vm1383_vm4 = vcmp.eq.s32.totalorder %v2483_v20, %v1382_v47 }
 0xb8d   :  { %1831 = vmatmul.mubr.msk.f32.vlgmr.msra.gmra.mrb[14].mxu1 %vm1383_vm4, %v2099_v38 }
 0xc60   :  { %v1452_v48 = vpop.f32.mrb[14].mxu1 }
 0xc61   :  { %v1453_v49 = vadd.f32 %v1452_v48, %v2486_v34  ;;  %v1832_v50 = vpop.f32.mrb[15].mxu1 }
 0xc63   :  { %v1456_v52 = vadd.f32 %v1453_v49, %v2457_v51 }
 0xc65   :  { %v1457_v53 = vmax.f32 %v1456_v52, 0.0 }
 0xc67   :  { %1842 = vmatmul.mubr.msk.f32.vlgmr.msra.gmra.mrb[10].mxu0 %vm130_vm1, %v1457_v53 }
 0xd3a   :  { %v1527_v54 = vpop.f32.mrb[10].mxu0 }
 0xd3b   :  { %v1528_v56 = vadd.f32 %v2472_v60, %v1527_v54  ;;  %v1843_v57 = vpop.f32.mrb[11].mxu0 }
 0xd3d   :  { %v1532_v58 = vcombine.high %v1528_v56, %v1528_v56  ;;  %v1539_v59 = vrot.slane %v1528_v56, %v2474_v61 }
 0xd3f   :  { %v1546_v20 = vrot.slane %v1532_v58, %v2474_v61  ;;  %v1547_v62 = vcombine.high %v1539_v59, %v1539_v59  ;;  %v1555_v38 = vrot.slane %v1539_v59, %v2474_v61  ;;  %1649 = vst.sshfl [vmem:[#allocation13 + $0x3] sm:$0x1 pattern:$0x73625140] %v1539_v59 }
 0xd41   :  { %v1548_v34 = vcombine.high %v1546_v20, %v1546_v20  ;;  %v1562_v63 = vrot.slane %v1546_v20, %v2474_v61  ;;  %v1569_v51 = vrot.slane %v1547_v62, %v2474_v61  ;;  %v1577_v2 = vcombine.high %v1555_v38, %v1555_v38  ;;  %1650 = vst.sshfl [vmem:[#allocation13 + $0x7] sm:$0x1 pattern:$0x73625140] %v1547_v62 }
 0xd42   :  { %1651 = vst.sshfl [vmem:[#allocation13 + $0x13] sm:$0x1 pattern:$0x73625140] %v1546_v20 }
 0xd43   :  { %v1576_v60 = vrot.slane %v1548_v34, %v2474_v61  ;;  %v1578_v3 = vcombine.high %v1562_v63, %v1562_v63  ;;  %v1579_v4 = vcombine.high %v1569_v51, %v1569_v51  ;;  %1591 = vst [vmem:[#allocation13 + $0xb] sm:$0x1] %v1577_v2  ;;  %1652 = vst.sshfl [vmem:[#allocation13 + $0x17] sm:$0x1 pattern:$0x73625140] %v1548_v34 }
 0xd45   :  { %v1580_v5 = vcombine.high %v1576_v60, %v1576_v60  ;;  %1592 = vst [vmem:[#allocation13 + $0xf] sm:$0x1] %v1579_v4  ;;  %1595 = vst [vmem:[#allocation13 + $0x1b] sm:$0x1] %v1578_v3 }
 0xd47   :  { %1596 = vst [vmem:[#allocation13 + $0x1f] sm:$0x1] %v1580_v5 }
 0xd48   :  { %2066 = shalt.err (!%p2063_p10)
}
 0xd49   :  { %s2067_s14 = scalar_lea.hbm %s2567_s12, 512 }
 0xd4a   :  { %p2068_p11 = scmp.ne.s32.totalorder %s2567_s12, %s2067_s14  ;;  %p2071_p12 = scmp.lt.u32.totalorder %s2067_s14, %s2567_s12 }
 0xd4c   :  { %p2073_p13 = pnand %p2071_p12, %p2068_p11 }
 0xd4e   :  { %2076 = shalt.err (!%p2073_p13)
}
 0xd4f   :  { %s2101_s16 = smov 64   ;;  %s2102_s1 = smov 4  }
 0xd50   :  { %1608 = dma.vmem_to_hbm [thread:$0]  %s1603_s25, 512, %s2567_s12, [#allocation4], %s2101_s16, %s2101_s16, %s2102_s1  }
 0xd51   :  { %2085 = dma.done.wait [#allocation4], 512  }
 0xd52   :  { %2086 = vsyncadd [#allocation4], 4294966784 }
 0xd53   :  { %1612 = vsyncpa [#allocation3], 1 }
 0xd54   :  { %1613 = vsyncpa [#allocation6], 1 }
 0xd55   :  { %1614 = vsyncpa [#allocation9], 1 }
 0xd56   :  { %1615 = vsyncpa [#allocation12], 1 }
 0xd57   :  { %1616 = vsyncpa [#allocation4], 1 }

</bundles_post_ra>
